<compile_context>
chip_gen: v6e
topology: v6e:2x2x1
jax: 0.10.0
libtpu: 0.0.40
codegen_flags: <defaults>
</compile_context>

<pallas_src>
import math

import jax
import jax.numpy as jnp
from jax import lax
from jax.experimental import pallas as pl
from jax.experimental.pallas import tpu as pltpu

_MIB = 1024 * 1024


def _vmem_budget_bytes():
    """Physical VMEM per core; falls back to the smallest current gen (64 MiB)."""
    try:
        return int(pltpu.get_tpu_info().vmem_capacity_bytes)
    except Exception:
        return 64 * _MIB


def _compiler_params(dim_sem, needed_bytes):
    budget = _vmem_budget_bytes()
    limit = int(needed_bytes * 1.4) + 2 * _MIB      # margin for compiler temps
    limit = max(16 * _MIB, limit)                    # never below any default
    limit = min(budget, limit)                       # never above physical
    return pltpu.CompilerParams(dimension_semantics=dim_sem,
                                vmem_limit_bytes=limit)


# ---------------------------------------------------------------------------
# Kernel 1: fused projections  y_i = x @ W_i + b_i   (1-, 2- or 3-way)
#   The activation tile is streamed from HBM once and reused for every GEMM;
#   weights / biases are resident and single-buffered.
# ---------------------------------------------------------------------------
def _make_fused_proj_kernel(n_proj, mxu_dtype):
    def kernel(*refs):
        x_ref = refs[0]
        w_refs = refs[1:1 + n_proj]
        b_refs = refs[1 + n_proj:1 + 2 * n_proj]
        o_refs = refs[1 + 2 * n_proj:1 + 3 * n_proj]
        x = x_ref[...].astype(mxu_dtype)
        for w_ref, b_ref, o_ref in zip(w_refs, b_refs, o_refs):
            y = jnp.dot(x, w_ref[...].astype(mxu_dtype),
                        preferred_element_type=jnp.float32) + b_ref[...]
            o_ref[...] = y.astype(o_ref.dtype)
    return kernel


def fused_proj(x, weights, biases, *, out_dtype=None, tile_m=512,
               mxu_dtype=jnp.bfloat16):
    """x: (N, D_in); W_i: (D_in, D_out); b_i: (D_out,) -> tuple of (N, D_out).

    Token(M)-tiled with double-buffered activation/output DMA; the weight and
    bias blocks have a constant index_map and are single-buffered.
    """
    n_proj = len(weights)
    n, d_in = x.shape
    d_out = weights[0].shape[1]
    out_dtype = x.dtype if out_dtype is None else out_dtype
    tm = n if n <= tile_m else tile_m
    # TODO(synk): add a K-reduction grid axis + f32 VMEM accumulator for very
    # large D_in (> ~2K), where resident (D_in, D_out) weights no longer fit.

    x_spec = pl.BlockSpec((tm, d_in), lambda i: (i, 0))
    w_spec = pl.BlockSpec((d_in, d_out), lambda i: (0, 0),
                          pipeline_mode=pl.Buffered(1))
    b_spec = pl.BlockSpec((1, d_out), lambda i: (0, 0),
                          pipeline_mode=pl.Buffered(1))
    o_spec = pl.BlockSpec((tm, d_out), lambda i: (i, 0))
    o_sds = jax.ShapeDtypeStruct((n, d_out), out_dtype)

    needed = (sum(int(w.size) * w.dtype.itemsize for w in weights)   # resident
              + n_proj * d_out * 4                                   # biases
              + 2 * tm * d_in * x.dtype.itemsize                     # x tiles
              + 2 * n_proj * tm * d_out * jnp.dtype(out_dtype).itemsize
              + 2 * tm * d_out * 4)                                  # live f32

    return pl.pallas_call(
        _make_fused_proj_kernel(n_proj, mxu_dtype),
        out_shape=tuple([o_sds] * n_proj),
        grid_spec=pltpu.PrefetchScalarGridSpec(
            num_scalar_prefetch=0,
            grid=(pl.cdiv(n, tm),),
            in_specs=[x_spec] + [w_spec] * n_proj + [b_spec] * n_proj,
            out_specs=tuple([o_spec] * n_proj),
        ),
        compiler_params=_compiler_params(("parallel",), needed),
    )(x, *weights, *[b.reshape(1, d_out) for b in biases])


def linear(x, w, b, *, out_dtype=None, tile_m=512, mxu_dtype=jnp.bfloat16):
    return fused_proj(x, (w,), (b,), out_dtype=out_dtype, tile_m=tile_m,
                      mxu_dtype=mxu_dtype)[0]


# ---------------------------------------------------------------------------
# Kernel 2a: full-key-length attention (used when attention weights must be
#            materialized).  grid = (batch, head_blocks, query_tiles).
# ---------------------------------------------------------------------------
def _make_attn_kernel(h_blk, dh, with_mask, mxu_dtype):
    def kernel(*refs):
        q_ref, k_ref, v_ref = refs[:3]
        if with_mask:
            mask_ref = refs[3]
            ctx_ref, attn_ref, ctx_sc = refs[4:]
        else:
            mask_ref = None
            ctx_ref, attn_ref, ctx_sc = refs[3:]

        if with_mask:
            masked = mask_ref[0] != 0               # (TQ, SK) bool, 1 = drop
        dnums = (((1,), (1,)), ((), ()))            # contract last dims (no K^T)

        for hh in range(h_blk):                     # small static head loop
            sl = slice(hh * dh, (hh + 1) * dh)
            # slice the Ref directly (no relayout of a loaded 128-lane tile)
            qh = q_ref[0, :, sl].astype(mxu_dtype)  # 1/sqrt(Dh) already folded
            kh = k_ref[0, :, sl].astype(mxu_dtype)
            vh = v_ref[0, :, sl].astype(mxu_dtype)

            scores = lax.dot_general(qh, kh, dnums,
                                     preferred_element_type=jnp.float32)
            if with_mask:
                scores = jnp.where(masked, jnp.float32(-1e18), scores)

            # numerically stable softmax over the key axis, f32 throughout
            s_max = jnp.max(scores, axis=-1, keepdims=True)
            p = jnp.exp(scores - s_max)
            denom = jnp.sum(p, axis=-1, keepdims=True)
            inv = pl.reciprocal(denom, approx=True)     # EUP slot
            inv = inv * (2.0 - denom * inv)             # Newton step -> ~f32
            attn = p * inv                              # (TQ, SK)

            attn_ref[0, hh] = attn.astype(attn_ref.dtype)

            # drop_attn == attn (eval-mode dropout); per-head context goes to
            # the f32 scratch: only one head's result is live at a time.
            ctx_sc[:, sl] = jnp.dot(attn.astype(mxu_dtype), vh,
                                    preferred_element_type=jnp.float32)

        ctx_ref[0] = ctx_sc[...].astype(ctx_ref.dtype)  # one lane-dense store
    return kernel


# ---------------------------------------------------------------------------
# Kernel 2b: flash-style attention (context only).  Key-tiled online softmax:
#            grid = (batch, head_blocks, query_tiles, key_tiles), key axis is
#            the reduction ("arbitrary"); running m/l/acc live in VMEM scratch.
# ---------------------------------------------------------------------------
def _make_flash_attn_kernel(h_blk, dh, with_mask, mxu_dtype):
    def kernel(*refs):
        q_ref, k_ref, v_ref = refs[:3]
        if with_mask:
            mask_ref = refs[3]
            ctx_ref, m_sc, l_sc, acc_sc = refs[4:]
        else:
            mask_ref = None
            ctx_ref, m_sc, l_sc, acc_sc = refs[3:]

        ki = pl.program_id(3)

        @pl.when(ki == 0)
        def _():
            m_sc[...] = jnp.full_like(m_sc, -jnp.inf)
            l_sc[...] = jnp.zeros_like(l_sc)
            acc_sc[...] = jnp.zeros_like(acc_sc)

        if with_mask:
            masked = mask_ref[0] != 0               # (TQ, TK)
        dnums = (((1,), (1,)), ((), ()))

        for hh in range(h_blk):
            sl = slice(hh * dh, (hh + 1) * dh)
            qh = q_ref[0, :, sl].astype(mxu_dtype)
            kh = k_ref[0, :, sl].astype(mxu_dtype)
            vh = v_ref[0, :, sl].astype(mxu_dtype)

            s = lax.dot_general(qh, kh, dnums,
                                preferred_element_type=jnp.float32)
            if with_mask:
                s = jnp.where(masked, jnp.float32(-1e18), s)

            m_prev = m_sc[hh]                                    # (TQ, 1)
            m_new = jnp.maximum(m_prev, jnp.max(s, axis=-1, keepdims=True))
            alpha = jnp.exp(m_prev - m_new)
            p = jnp.exp(s - m_new)
            l_sc[hh] = alpha * l_sc[hh] + jnp.sum(p, axis=-1, keepdims=True)
            acc_sc[:, sl] = alpha * acc_sc[:, sl] + jnp.dot(
                p.astype(mxu_dtype), vh, preferred_element_type=jnp.float32)
            m_sc[hh] = m_new

        @pl.when(ki == pl.num_programs(3) - 1)
        def _():
            for hh in range(h_blk):
                sl = slice(hh * dh, (hh + 1) * dh)
                denom = l_sc[hh]
                inv = pl.reciprocal(denom, approx=True)
                inv = inv * (2.0 - denom * inv)
                acc_sc[:, sl] = acc_sc[:, sl] * inv
            ctx_ref[0] = acc_sc[...].astype(ctx_ref.dtype)       # lane-dense
    return kernel


def mha_attention_core(q, k, v, mask, head_count, dim_per_head, *,
                       return_attn=True, attn_dtype=jnp.float32,
                       tile_q=256, tile_k=512, mxu_dtype=jnp.bfloat16):
    """q: (B, Sq, D); k, v: (B, Sk, D); mask: (B, Sq, Sk) int8 or None.

    Query must already carry the 1/sqrt(dim_per_head) scale.
    Returns (context (B, Sq, D), attn (B, H, Sq, Sk) or None).
    """
    b, sq, d = q.shape
    sk = k.shape[1]
    h, dh = head_count, dim_per_head

    # Pack heads per grid step so the lane (last) block dim is 128 (or full D).
    if dh % 128 == 0:
        h_blk = 1
    elif d % 128 == 0 and 128 % dh == 0 and h % (128 // dh) == 0:
        h_blk = 128 // dh
    else:
        h_blk = h                        # small models: take full D per step
    d_blk = h_blk * dh
    n_hb = h // h_blk

    budget = _vmem_budget_bytes()
    # v7x (64 MiB VMEM): cap the query tile when the full-score path is used or
    # Sk is long, so (TQ,Sk) scores + attn blocks + K/V slabs still fit.
    if budget <= 64 * _MIB and (return_attn or sk >= 4096):
        tile_q = min(tile_q, 128)
    tq = sq if sq <= tile_q else tile_q

    with_mask = mask is not None
    q_isz = q.dtype.itemsize
    ctx_sds = jax.ShapeDtypeStruct((b, sq, d), q.dtype)

    if return_attn:
        # ---- full-Sk scores: attention weights must be materialized --------
        grid = (b, n_hb, pl.cdiv(sq, tq))
        q_spec = pl.BlockSpec((1, tq, d_blk), lambda bi, hi, qi: (bi, qi, hi))
        kv_spec = pl.BlockSpec((1, sk, d_blk), lambda bi, hi, qi: (bi, 0, hi))
        in_specs = [q_spec, kv_spec, kv_spec]
        inputs = [q, k, v]
        if with_mask:
            in_specs.append(pl.BlockSpec((1, tq, sk),
                                         lambda bi, hi, qi: (bi, qi, 0)))
            inputs.append(mask)
        attn_isz = jnp.dtype(attn_dtype).itemsize
        out_shape = (ctx_sds, jax.ShapeDtypeStruct((b, h, sq, sk), attn_dtype))
        out_specs = (
            pl.BlockSpec((1, tq, d_blk), lambda bi, hi, qi: (bi, qi, hi)),
            pl.BlockSpec((1, h_blk, tq, sk),
                         lambda bi, hi, qi: (bi, hi, qi, 0)))
        needed = (2 * tq * d_blk * q_isz + 4 * sk * d_blk * q_isz
                  + (2 * tq * sk if with_mask else 0)
                  + 2 * tq * d_blk * q_isz
                  + 2 * h_blk * tq * sk * attn_isz
                  + tq * d_blk * 4 + 4 * tq * sk * 4)
        ctx, attn = pl.pallas_call(
            _make_attn_kernel(h_blk, dh, with_mask, mxu_dtype),
            out_shape=out_shape,
            grid_spec=pltpu.PrefetchScalarGridSpec(
                num_scalar_prefetch=0,
                grid=grid,
                in_specs=in_specs,
                out_specs=out_specs,
                scratch_shapes=[pltpu.VMEM((tq, d_blk), jnp.float32)]),
            compiler_params=_compiler_params(
                ("parallel", "parallel", "parallel"), needed),
        )(*inputs)
        return ctx, attn

    # ---- flash path: key-tiled online softmax (context only) ---------------
    tk = tile_k if (sk > tile_k and sk % tile_k == 0) else sk
    if with_mask and tk != sk and tk % 128 != 0:
        tk = sk                                    # keep the mask block legal
    grid = (b, n_hb, pl.cdiv(sq, tq), pl.cdiv(sk, tk))
    q_spec = pl.BlockSpec((1, tq, d_blk), lambda bi, hi, qi, ki: (bi, qi, hi))
    kv_spec = pl.BlockSpec((1, tk, d_blk), lambda bi, hi, qi, ki: (bi, ki, hi))
    in_specs = [q_spec, kv_spec, kv_spec]
    inputs = [q, k, v]
    if with_mask:
        in_specs.append(pl.BlockSpec((1, tq, tk),
                                     lambda bi, hi, qi, ki: (bi, qi, ki)))
        inputs.append(mask)
    ctx_spec = pl.BlockSpec((1, tq, d_blk), lambda bi, hi, qi, ki: (bi, qi, hi))
    needed = (2 * tq * d_blk * q_isz + 4 * tk * d_blk * q_isz
              + (2 * tq * tk if with_mask else 0)
              + 2 * tq * d_blk * q_isz
              + tq * d_blk * 4 + 2 * h_blk * tq * 128 * 4
              + 4 * tq * tk * 4)
    ctx = pl.pallas_call(
        _make_flash_attn_kernel(h_blk, dh, with_mask, mxu_dtype),
        out_shape=ctx_sds,
        grid_spec=pltpu.PrefetchScalarGridSpec(
            num_scalar_prefetch=0,
            grid=grid,
            in_specs=in_specs,
            out_specs=ctx_spec,
            scratch_shapes=[pltpu.VMEM((h_blk, tq, 1), jnp.float32),
                            pltpu.VMEM((h_blk, tq, 1), jnp.float32),
                            pltpu.VMEM((tq, d_blk), jnp.float32)]),
        compiler_params=_compiler_params(
            ("parallel", "parallel", "parallel", "arbitrary"), needed),
    )(*inputs)
    return ctx, None


# ---------------------------------------------------------------------------
# Full module forward (glue in plain JAX, hot paths in Pallas).
# ---------------------------------------------------------------------------
class MultiHeadedAttentionPallas:
    def __init__(self, head_count, model_dim, key, dropout=0.1,
                 mxu_dtype=jnp.bfloat16, attn_dtype=jnp.float32):
        assert model_dim % head_count == 0
        self.head_count = head_count
        self.model_dim = model_dim
        self.dim_per_head = model_dim // head_count
        # bf16 MXU operands by default (peak MXU path + half the DMA bytes);
        # accumulation and softmax math stay f32.  Use jnp.float32 here for
        # strict 1e-4 validation against the reference.
        self.mxu_dtype = mxu_dtype
        self.attn_dtype = attn_dtype
        self.act_dtype = (jnp.bfloat16 if mxu_dtype == jnp.bfloat16
                          else jnp.float32)
        # TODO(synk): dropout is eval-mode identity; layer_cache and
        # max_relative_positions>0 branches are not implemented.
        # TODO(synk): optionally fuse the final W_o projection into the flash
        # kernel's finalize step (return_attn=False path) to skip one HBM
        # round-trip of the context tensor.

        def init_linear(k, d_in, d_out):
            k1, k2 = jax.random.split(k)
            bound = 1.0 / math.sqrt(d_in)
            # stored as (d_in, d_out) so kernels compute x @ W + b
            w = jax.random.uniform(k1, (d_in, d_out), jnp.float32, -bound, bound)
            b = jax.random.uniform(k2, (d_out,), jnp.float32, -bound, bound)
            return w, b

        kk, kv, kq, kf = jax.random.split(key, 4)
        # f32 masters (used by the pure-JAX reference)
        self.w_k, self.b_k = init_linear(kk, model_dim, model_dim)
        self.w_v, self.b_v = init_linear(kv, model_dim, model_dim)
        self.w_q, self.b_q = init_linear(kq, model_dim, model_dim)
        self.w_o, self.b_o = init_linear(kf, model_dim, model_dim)

        # Kernel-side copies: 1/sqrt(dim_per_head) folded into W_q / b_q and
        # weights stored in the MXU dtype (halves resident VMEM + weight DMA).
        inv_s = 1.0 / math.sqrt(self.dim_per_head)
        self.w_k_c = self.w_k.astype(mxu_dtype)
        self.w_v_c = self.w_v.astype(mxu_dtype)
        self.w_q_c = (self.w_q * inv_s).astype(mxu_dtype)
        self.w_o_c = self.w_o.astype(mxu_dtype)
        self.b_q_s = self.b_q * inv_s          # biases stay f32 (f32 accum.)

    def __call__(self, key, value, query, mask=None, return_attn=True):
        b, kl, d = key.shape
        ql = query.shape[1]
        mxu, act = self.mxu_dtype, self.act_dtype

        if key is value and key is query:
            # Self-attention: one fused launch, activations read from HBM once.
            k_p, v_p, q_p = fused_proj(
                query.reshape(b * ql, d),
                (self.w_k_c, self.w_v_c, self.w_q_c),
                (self.b_k, self.b_v, self.b_q_s),
                out_dtype=act, mxu_dtype=mxu)
        elif key is value:
            # Cross-attention: fused 2-way K/V projection of the memory bank.
            k_p, v_p = fused_proj(
                key.reshape(b * kl, d),
                (self.w_k_c, self.w_v_c), (self.b_k, self.b_v),
                out_dtype=act, mxu_dtype=mxu)
            q_p = linear(query.reshape(b * ql, d), self.w_q_c, self.b_q_s,
                         out_dtype=act, mxu_dtype=mxu)
        else:
            k_p = linear(key.reshape(b * kl, d), self.w_k_c, self.b_k,
                         out_dtype=act, mxu_dtype=mxu)
            v_p = linear(value.reshape(b * kl, d), self.w_v_c, self.b_v,
                         out_dtype=act, mxu_dtype=mxu)
            q_p = linear(query.reshape(b * ql, d), self.w_q_c, self.b_q_s,
                         out_dtype=act, mxu_dtype=mxu)

        # Stay in (B, S, D) layout — no head transposes around the attention
        # kernel; head groups are addressed as lane-dense column blocks.
        k_h = k_p.reshape(b, kl, d)
        v_h = v_p.reshape(b, kl, d)
        q_h = q_p.reshape(b, ql, d)

        mask_i = None if mask is None else mask.astype(jnp.int8)

        ctx, attn = mha_attention_core(
            q_h, k_h, v_h, mask_i, self.head_count, self.dim_per_head,
            return_attn=return_attn, attn_dtype=self.attn_dtype,
            mxu_dtype=mxu)

        out = linear(ctx.reshape(b * ql, d), self.w_o_c, self.b_o,
                     out_dtype=jnp.float32, mxu_dtype=mxu)
        return out.reshape(b, ql, d), attn


# ---------------------------------------------------------------------------
# Pure-JAX references (independent of the Pallas path).
# ---------------------------------------------------------------------------
def reference_forward(m, key, value, query, mask=None):
    b, kl, d = key.shape
    ql = query.shape[1]
    h, dh = m.head_count, m.dim_per_head

    k_p = key.reshape(-1, d) @ m.w_k + m.b_k
    v_p = value.reshape(-1, d) @ m.w_v + m.b_v
    q_p = query.reshape(-1, d) @ m.w_q + m.b_q

    def shape(x, s):
        return x.reshape(b, s, h, dh).transpose(0, 2, 1, 3)

    k_h, v_h, q_h = shape(k_p, kl), shape(v_p, kl), shape(q_p, ql)
    q_h = q_h / math.sqrt(dh)
    scores = jnp.einsum("bhqd,bhkd->bhqk", q_h, k_h).astype(jnp.float32)
    if mask is not None:
        scores = jnp.where(mask[:, None].astype(bool), -1e18, scores)
    attn = jax.nn.softmax(scores, axis=-1)
    ctx = jnp.einsum("bhqk,bhkd->bhqd", attn, v_h)
    context = ctx.transpose(0, 2, 1, 3).reshape(b, ql, d)
    out = (context.reshape(-1, d) @ m.w_o + m.b_o).reshape(b, ql, d)
    return out, attn


def reference_attention_core(q, k, v, mask, h, dh):
    b, sq, d = q.shape
    sk = k.shape[1]

    def split(x, s):
        return x.reshape(b, s, h, dh).transpose(0, 2, 1, 3)

    qh, kh, vh = split(q, sq), split(k, sk), split(v, sk)
    s = jnp.einsum("bhqd,bhkd->bhqk", qh, kh).astype(jnp.float32)
    if mask is not None:
        s = jnp.where(mask[:, None].astype(bool), -1e18, s)
    a = jax.nn.softmax(s, axis=-1)
    ctx = jnp.einsum("bhqk,bhkd->bhqd", a, vh)
    return ctx.transpose(0, 2, 1, 3).reshape(b, sq, d), a


if __name__ == "__main__":
    batch, seq, model_dim, heads = 2, 8, 32, 4

    root = jax.random.PRNGKey(0)
    k_param, k_key, k_val, k_qry, k_core = jax.random.split(root, 5)

    key_in = jax.random.normal(k_key, (batch, seq, model_dim), jnp.float32)
    value_in = jax.random.normal(k_val, (batch, seq, model_dim), jnp.float32)
    query_in = jax.random.normal(k_qry, (batch, seq, model_dim), jnp.float32)

    causal = jnp.triu(jnp.ones((seq, seq), dtype=bool), k=1)
    mask = jnp.broadcast_to(causal, (batch, seq, seq))

    # ------------------ strict float32 validation mode ------------------
    mha = MultiHeadedAttentionPallas(heads, model_dim, k_param,
                                     mxu_dtype=jnp.float32)
    ref_out, ref_attn = reference_forward(mha, key_in, value_in, query_in)
    ref_out_m, ref_attn_m = reference_forward(mha, key_in, value_in, query_in, mask)
    ref_out_s, ref_attn_s = reference_forward(mha, query_in, query_in, query_in, mask)
    ref_out_x, ref_attn_x = reference_forward(mha, key_in, key_in, query_in, mask)

    # 1) general path (distinct K/V/Q), no mask -> no-mask kernel variant.
    out, attns = mha(key_in, value_in, query_in, mask=None)
    out = jax.block_until_ready(out)
    assert out.shape == (batch, seq, model_dim)
    assert attns.shape == (batch, heads, seq, seq)
    assert jnp.allclose(out, ref_out, atol=1e-4), "output mismatch (no mask)"
    assert jnp.allclose(attns, ref_attn, atol=1e-4), "attn mismatch (no mask)"

    # 2) masked path (causal mask, 1 = masked out).
    out_m, attn_m = mha(key_in, value_in, query_in, mask=mask)
    jax.block_until_ready(out_m)
    assert jnp.allclose(out_m, ref_out_m, atol=1e-4), "output mismatch (mask)"
    assert jnp.allclose(attn_m, ref_attn_m, atol=1e-4), "attn mismatch (mask)"

    # 3) self-attention -> fused 3-way QKV projection kernel.
    out_s, attn_s = mha(query_in, query_in, query_in, mask=mask)
    jax.block_until_ready(out_s)
    assert jnp.allclose(out_s, ref_out_s, atol=1e-4), "output mismatch (self)"
    assert jnp.allclose(attn_s, ref_attn_s, atol=1e-4), "attn mismatch (self)"

    # 4) cross-attention (key is value) -> fused 2-way KV projection kernel.
    out_x, attn_x = mha(key_in, key_in, query_in, mask=mask)
    jax.block_until_ready(out_x)
    assert jnp.allclose(out_x, ref_out_x, atol=1e-4), "output mismatch (cross)"
    assert jnp.allclose(attn_x, ref_attn_x, atol=1e-4), "attn mismatch (cross)"

    # 5) context-only path -> flash (online-softmax) kernel, single key tile.
    out_f, attn_f = mha(key_in, value_in, query_in, mask=mask, return_attn=False)
    jax.block_until_ready(out_f)
    assert attn_f is None
    assert jnp.allclose(out_f, ref_out_m, atol=2e-4), "output mismatch (flash)"

    # 6) attention core with multiple key tiles (flash reduction over the
    #    key-axis grid dimension) + full-score path at longer key length.
    b2, sq2, sk2, d2, h2 = 2, 16, 256, 32, 4
    dh2 = d2 // h2
    kq2, kk2, kv2, km2 = jax.random.split(k_core, 4)
    q2 = jax.random.normal(kq2, (b2, sq2, d2), jnp.float32)
    k2 = jax.random.normal(kk2, (b2, sk2, d2), jnp.float32)
    v2 = jax.random.normal(kv2, (b2, sk2, d2), jnp.float32)
    m2 = jax.random.uniform(km2, (b2, sq2, sk2)) < 0.3
    ref_ctx2, ref_attn2 = reference_attention_core(q2, k2, v2, m2, h2, dh2)

    ctx2, none2 = mha_attention_core(q2, k2, v2, m2.astype(jnp.int8), h2, dh2,
                                     return_attn=False, tile_k=128,
                                     mxu_dtype=jnp.float32)
    jax.block_until_ready(ctx2)
    assert none2 is None
    assert jnp.allclose(ctx2, ref_ctx2, atol=1e-3), "ctx mismatch (flash long)"

    ctx2f, attn2f = mha_attention_core(q2, k2, v2, m2.astype(jnp.int8), h2, dh2,
                                        return_attn=True,
                                        mxu_dtype=jnp.float32)
    jax.block_until_ready(ctx2f)
    assert jnp.allclose(ctx2f, ref_ctx2, atol=1e-3), "ctx mismatch (full long)"
    assert jnp.allclose(attn2f, ref_attn2, atol=2e-4), "attn mismatch (full long)"

    ref_ctx2n, _ = reference_attention_core(q2, k2, v2, None, h2, dh2)
    ctx2n, _ = mha_attention_core(q2, k2, v2, None, h2, dh2,
                                  return_attn=False, tile_k=128,
                                  mxu_dtype=jnp.float32)
    jax.block_until_ready(ctx2n)
    assert jnp.allclose(ctx2n, ref_ctx2n, atol=1e-3), "ctx mismatch (flash nomask)"

    # ------------------ bfloat16 performance mode (default) ------------------
    mha_bf16 = MultiHeadedAttentionPallas(heads, model_dim, k_param,
                                          attn_dtype=jnp.bfloat16)
    out_b, attn_b = mha_bf16(key_in, value_in, query_in, mask=mask)
    jax.block_until_ready(out_b)
    assert jnp.allclose(out_b, ref_out_m, atol=7.5e-2), "output mismatch (bf16)"
    assert jnp.allclose(attn_b.astype(jnp.float32), ref_attn_m,
                        atol=3e-2), "attn mismatch (bf16)"
    out_bf, _ = mha_bf16(key_in, value_in, query_in, mask=mask,
                         return_attn=False)
    jax.block_until_ready(out_bf)
    assert jnp.allclose(out_bf, ref_out_m, atol=7.5e-2), "output mismatch (bf16 flash)"

    print("KERNEL_OK")
</pallas_src>

<mosaic_0001>
module attributes {stable_mosaic.version = 11 : i64} {
  func.func @kernel(%arg0: i32, %arg1: memref<16x32xf32, #tpu.memory_space<vmem>>, %arg2: memref<32x32xf32, #tpu.memory_space<vmem>>, %arg3: memref<1x32xf32, #tpu.memory_space<vmem>>, %arg4: memref<16x32xf32, #tpu.memory_space<vmem>>) attributes {dimension_semantics = [#tpu.dimension_semantics<parallel>], iteration_bounds = array<i64: 1>, scalar_prefetch = 0 : i64, scratch_operands = 0 : i64, tpu.core_type = #tpu.core_type<tc>, window_params = [{transform_indices = @transform_0, window_bounds = array<i64: 16, 32>}, {pipeline_mode = #tpu.pipeline_mode<synchronous>, transform_indices = @transform_1, window_bounds = array<i64: 32, 32>}, {pipeline_mode = #tpu.pipeline_mode<synchronous>, transform_indices = @transform_2, window_bounds = array<i64: 1, 32>}, {transform_indices = @transform_3, window_bounds = array<i64: 16, 32>}]} {
    %c0 = arith.constant 0 : index
    %c0_0 = arith.constant 0 : index
    %0 = vector.load %arg1[%c0, %c0_0] : memref<16x32xf32, #tpu.memory_space<vmem>>, vector<16x32xf32>
    %c0_1 = arith.constant 0 : index
    %c0_2 = arith.constant 0 : index
    %1 = vector.load %arg2[%c0_1, %c0_2] : memref<32x32xf32, #tpu.memory_space<vmem>>, vector<32x32xf32>
    %cst = arith.constant dense<0.000000e+00> : vector<16x32xf32>
    %2 = tpu.matmul %0, %1, %cst {dimension_numbers = #tpu.dot_dimension_numbers<[1], [0], [0], [1], [0, 0, 1, 1], [], []>} : vector<16x32xf32>, vector<32x32xf32>, vector<16x32xf32> -> vector<16x32xf32>
    %c0_3 = arith.constant 0 : index
    %c0_4 = arith.constant 0 : index
    %3 = vector.load %arg3[%c0_3, %c0_4] : memref<1x32xf32, #tpu.memory_space<vmem>>, vector<1x32xf32>
    %4 = vector.broadcast %3 : vector<1x32xf32> to vector<16x32xf32>
    %5 = arith.addf %2, %4 : vector<16x32xf32>
    %c0_5 = arith.constant 0 : index
    %c0_6 = arith.constant 0 : index
    %6 = vector.load %arg4[%c0_5, %c0_6] : memref<16x32xf32, #tpu.memory_space<vmem>>, vector<16x32xf32>
    tpu.vector_store %arg4[%c0_5, %c0_6], %5 {strides = array<i32>} : memref<16x32xf32, #tpu.memory_space<vmem>>, vector<16x32xf32>,
    return
  }
  func.func @transform_0(%arg0: i32) -> (i32, i32) {
    %c0_i32 = arith.constant 0 : i32
    %c0_i32_0 = arith.constant 0 : i32
    return %arg0, %c0_i32 : i32, i32
  }
  func.func @transform_1(%arg0: i32) -> (i32, i32) {
    %c0_i32 = arith.constant 0 : i32
    %c0_i32_0 = arith.constant 0 : i32
    %c0_i32_1 = arith.constant 0 : i32
    return %c0_i32, %c0_i32_0 : i32, i32
  }
  func.func @transform_2(%arg0: i32) -> (i32, i32) {
    %c0_i32 = arith.constant 0 : i32
    %c0_i32_0 = arith.constant 0 : i32
    %c0_i32_1 = arith.constant 0 : i32
    return %c0_i32, %c0_i32_0 : i32, i32
  }
  func.func @transform_3(%arg0: i32) -> (i32, i32) {
    %c0_i32 = arith.constant 0 : i32
    %c0_i32_0 = arith.constant 0 : i32
    return %arg0, %c0_i32 : i32, i32
  }
}

</mosaic_0001>

<bundles_post_ra>
// kernel: tpu_custom_call.1
= control target key start
LH: loop header
LB: loop body
LE: loop exit
PB: predicated region body
PF: predicated region fallthrough
CT: control target
= control target key end

     0   :  { %8 = vsyncpa [#allocation3], 0  ;;  %s299_s0 = inlined_call_operand.hbm [shape: f32[16,32], index: 0, kind: input, shape index: {}]   ;;  %s300_s1 = inlined_call_operand.hbm [shape: f32[32,32], index: 1, kind: input, shape index: {}]   ;;  %s301_s2 = inlined_call_operand.vmem [shape: f32[1,32], index: 2, kind: input, shape index: {}]   ;;  %s302_s3 = inlined_call_operand.hbm [shape: f32[16,32], index: 3, kind: output, shape index: {}]  }
   0x1   :  { %9 = vsyncpa [#allocation6], 0 }
   0x2   :  { %10 = vsyncpa [#allocation4], 0  ;;  %s249_s12 = smov [#allocation2]  }
   0x3   :  { %s16_s13 = sshll.u32 %s249_s12, 4  ;;  %s17_s13 = int_to_ptr.vmem [resolvable:$true] %s16_s13 }
   0x4   :  { %s191_s14 = scalar_lea.vmem %s17_s13, 256  ;;  %p196_p1 = scmp.lt.s32.totalorder %s17_s13, %s17_s13 }
   0x5   :  { %p192_p0 = scmp.ne.s32.totalorder %s17_s13, %s191_s14  ;;  %p197_p2 = scmp.lt.s32.totalorder %s191_s14, %s191_s14 }
   0x7   :  { %p198_p3 = por %p197_p2, %p196_p1 }
   0x9   :  { %p199_p4 = pnand %p198_p3, %p192_p0 }
   0xb   :  { %202 = shalt.err (!%p199_p4)
}
   0xc   :  { %s250_s15 = smov 128   ;;  %s251_s16 = smov 8  }
   0xd   :  { %22 = dma.hbm_to_vmem [thread:$0]  %s299_s0, 256, %s17_s13, [#allocation3], %s250_s15, %s250_s15, %s251_s16  }
   0xe   :  { %s252_s19 = smov [#allocation5]  }
   0xf   :  { %s28_s20 = sshll.u32 %s252_s19, 4  ;;  %s29_s20 = int_to_ptr.vmem [resolvable:$true] %s28_s20 }
  0x10   :  { %s211_s21 = scalar_lea.vmem %s29_s20, 512  ;;  %p216_p6 = scmp.lt.s32.totalorder %s29_s20, %s29_s20 }
  0x11   :  { %p212_p5 = scmp.ne.s32.totalorder %s29_s20, %s211_s21  ;;  %p217_p7 = scmp.lt.s32.totalorder %s211_s21, %s211_s21 }
  0x13   :  { %p218_p8 = por %p217_p7, %p216_p6 }
  0x15   :  { %p219_p9 = pnand %p218_p8, %p212_p5 }
  0x17   :  { %222 = shalt.err (!%p219_p9)
}
  0x18   :  { %34 = dma.hbm_to_vmem [thread:$0]  %s300_s1, 512, %s29_s20, [#allocation6], %s250_s15, %s250_s15, %s251_s16  }
  0x19   :  { %243 = dma.done.wait [#allocation3], 256  }
  0x1a   :  { %244 = vsyncadd [#allocation3], 4294967040 }
  0x1b   :  { %245 = dma.done.wait [#allocation6], 512  }
  0x1c   :  { %246 = vsyncadd [#allocation6], 4294966784  ;;  %vm56_vm0 = vcmask 261120   ;;  %v48_v0 = vld [vmem:[#allocation5 + $0x18] sm:$0xff]  ;;  %v47_v1 = vld [vmem:[#allocation5 + $0x10] sm:$0xff]  ;;  %s253_s24 = smov [#allocation7]  }
  0x1d   :  { %167 = vmatprep.subr.mxu0 %v48_v0  ;;  %v43_v2 = vld [vmem:[#allocation2] sm:$0xff]  ;;  %v46_v3 = vld [vmem:[#allocation5 + $0x8] sm:$0xff]  ;;  %v45_v4 = vld [vmem:[#allocation5] sm:$0xff]  ;;  %s145_s25 = sshll.u32 %s253_s24, 4  ;;  %s146_s25 = int_to_ptr.vmem [resolvable:$true] %s145_s25 }
  0x1e   :  { %168 = vmatpush3.msra.mxu0 %v48_v0  ;;  %175 = vmatprep.mubr.msk.f32.mxu0 %vm56_vm0, %v43_v2  ;;  %v44_v5 = vld [vmem:[#allocation2 + $0x8] sm:$0xff]  ;;  %v158_v6 = vld [vmem:[%s301_s2] ss:$0 sm:$0xff]  ;;  %s223_s26 = scalar_lea.vmem %s146_s25, 256  ;;  %p228_p11 = scmp.lt.s32.totalorder %s146_s25, %s146_s25 }
  0x1f   :  { %169 = vmatprep.subr.mxu0 %v47_v1  ;;  %p224_p10 = scmp.ne.s32.totalorder %s146_s25, %s223_s26  ;;  %p229_p12 = scmp.lt.s32.totalorder %s223_s26, %s223_s26 }
  0x20   :  { %170 = vmatpush3.msra.mxu0 %v47_v1 }
  0x21   :  { %171 = vmatprep.subr.mxu0 %v46_v3  ;;  %p230_p13 = por %p229_p12, %p228_p11 }
  0x22   :  { %172 = vmatpush3.msra.mxu0 %v46_v3 }
  0x23   :  { %173 = vmatprep.subr.mxu0 %v45_v4  ;;  %p231_p0 = pnand %p230_p13, %p224_p10 }
  0x24   :  { %174 = vmatpush3.msra.mxu0 %v45_v4 }
  0x25   :  { %176 = vmatmul.mubr.msk.f32.vlgmr.msra.gmra.mxu0 %vm56_vm0, %v44_v5 }
  0xe5   :  { %v177_v7 = vpop.f32.mrf.mxu0 }
  0xe6   :  { %v135_v8 = vadd.f32 %v177_v7, %v158_v6 }
  0xe7   :  { %v129_v9 = vpop.f32.mrf.mxu0 }
  0xe8   :  { %139 = vst.msk [vmem:[#allocation7 + $0x8] sm:$0xff] %vm56_vm0, %v135_v8  ;;  %v130_v10 = vadd.f32 %v158_v6, %v129_v9 }
  0xea   :  { %138 = vst.msk [vmem:[#allocation7] sm:$0xff] %vm56_vm0, %v130_v10 }
  0xeb   :  { %234 = shalt.err (!%p231_p0)
}
  0xec   :  { %151 = dma.vmem_to_hbm [thread:$0]  %s146_s25, 256, %s302_s3, [#allocation4], %s250_s15, %s250_s15, %s251_s16  }
  0xed   :  { %247 = dma.done.wait [#allocation4], 256  }
  0xee   :  { %248 = vsyncadd [#allocation4], 4294967040 }
  0xef   :  { %155 = vsyncpa [#allocation3], 1 }
  0xf0   :  { %156 = vsyncpa [#allocation6], 1 }
  0xf1   :  { %157 = vsyncpa [#allocation4], 1 }

</bundles_post_ra>
